<compile_context>
chip_gen: v7x
topology: tpu7x:2x2x1
jax: 0.10.0
libtpu: 0.0.40
codegen_flags: <defaults>
</compile_context>

<pallas_src>
import jax
import jax.numpy as jnp
from jax.experimental import pallas as pl
from jax.experimental.pallas import tpu as pltpu


def _mlp2_kernel(x_ref, a_ref, w1o_ref, w1a_ref, b1_ref, w2_ref, b2_ref, o_ref):
    # Layer 1: split-K matmul (== concat([x, a]) @ W1), f32 accumulation on MXU.
    h = jnp.dot(x_ref[...], w1o_ref[...], preferred_element_type=jnp.float32)
    h = h + jnp.dot(a_ref[...], w1a_ref[...], preferred_element_type=jnp.float32)
    h = jnp.maximum(h + b1_ref[...], 0.0)          # b1 is (1, H1) -> broadcasts
    # Layer 2: cast activations to bf16 so the MXU runs its native bf16 path.
    y = jnp.dot(h.astype(w2_ref.dtype), w2_ref[...],
                preferred_element_type=jnp.float32)
    o_ref[...] = jnp.maximum(y + b2_ref[...], 0.0)


def vector_encoder_with_action(x, action, w1, b1, w2, b2, *, tm=128):
    """Pallas implementation of VectorEncoderWithAction.forward (defaults).

    x:       (B, obs_dim)        float
    action:  (B, action_size)    float (continuous-action path)
    w1:      (obs_dim + action_size, H1), b1: (H1,)
    w2:      (H1, H2),                    b2: (H2,)
    Returns  (B, H2) float32.
    """
    B, obs_dim = x.shape
    act_dim = action.shape[1]
    D_in = obs_dim + act_dim
    H1 = w1.shape[1]
    H2 = w2.shape[1]
    assert w1.shape == (D_in, H1)
    assert w2.shape == (H1, H2)

    # bf16 inputs/weights, f32 accumulation (review: halves dominant HBM bytes).
    x_bf = x.astype(jnp.bfloat16)
    a_bf = action.astype(jnp.bfloat16)
    w1_obs = w1[:obs_dim].astype(jnp.bfloat16)     # (obs_dim, H1)
    w1_act = w1[obs_dim:].astype(jnp.bfloat16)     # (act_dim, H1)
    w2_bf = w2.astype(jnp.bfloat16)
    b1_2d = b1.reshape(1, H1).astype(jnp.float32)
    b2_2d = b2.reshape(1, H2).astype(jnp.float32)

    # Batch tiling: single block for small B; 128-row tiles + parallel grid
    # otherwise (weights/biases stay VMEM-resident via constant index_maps).
    TM = B if B <= tm else tm
    grid = (pl.cdiv(B, TM),)

    flops = 2 * B * (D_in * H1 + H1 * H2)
    bytes_accessed = (
        x_bf.size * 2 + a_bf.size * 2 + w1_obs.size * 2 + w1_act.size * 2
        + w2_bf.size * 2 + b1_2d.size * 4 + b2_2d.size * 4 + B * H2 * 4
    )

    return pl.pallas_call(
        _mlp2_kernel,
        out_shape=jax.ShapeDtypeStruct((B, H2), jnp.float32),
        grid=grid,
        in_specs=[
            pl.BlockSpec((TM, obs_dim), lambda i: (i, 0)),   # x tile (streams)
            pl.BlockSpec((TM, act_dim), lambda i: (i, 0)),   # action tile
            pl.BlockSpec((obs_dim, H1), lambda i: (0, 0)),   # W1_obs (resident)
            pl.BlockSpec((act_dim, H1), lambda i: (0, 0)),   # W1_act (resident)
            pl.BlockSpec((1, H1), lambda i: (0, 0)),         # b1     (resident)
            pl.BlockSpec((H1, H2), lambda i: (0, 0)),        # W2     (resident)
            pl.BlockSpec((1, H2), lambda i: (0, 0)),         # b2     (resident)
        ],
        out_specs=pl.BlockSpec((TM, H2), lambda i: (i, 0)),
        compiler_params=pltpu.CompilerParams(
            dimension_semantics=("parallel",),
        ),
        cost_estimate=pl.CostEstimate(
            flops=flops, transcendentals=0, bytes_accessed=bytes_accessed
        ),
    )(x_bf, a_bf, w1_obs, w1_act, b1_2d, w2_bf, b2_2d)


def _init_linear(key, fan_in, fan_out):
    """Deterministic init mimicking PyTorch nn.Linear default (uniform +-1/sqrt(fan_in))."""
    kw, kb = jax.random.split(key)
    bound = 1.0 / jnp.sqrt(float(fan_in))
    # Stored as (in, out) so the kernel computes z @ W directly (== x @ W.T in torch).
    w = jax.random.uniform(kw, (fan_in, fan_out), jnp.float32, -bound, bound)
    b = jax.random.uniform(kb, (fan_out,), jnp.float32, -bound, bound)
    return w, b


def _reference(x, action, w1, b1, w2, b2):
    z = jnp.concatenate([x, action], axis=1)
    h = jnp.maximum(z @ w1 + b1, 0.0)
    return jnp.maximum(h @ w2 + b2, 0.0)


if __name__ == "__main__":
    obs_dim = 32
    action_size = 8
    hidden_units = (256, 256)  # module default

    key = jax.random.PRNGKey(0)
    kx, ka, k1, k2 = jax.random.split(key, 4)

    in_dim = obs_dim + action_size
    w1, b1 = _init_linear(k1, in_dim, hidden_units[0])
    w2, b2 = _init_linear(k2, hidden_units[0], hidden_units[1])

    # --- small batch: single grid point, full-array blocks ---
    batch = 8
    x = jax.random.normal(kx, (batch, obs_dim), jnp.float32)
    action = jax.random.normal(ka, (batch, action_size), jnp.float32)

    out = vector_encoder_with_action(x, action, w1, b1, w2, b2)
    out = jax.block_until_ready(out)
    ref = _reference(x, action, w1, b1, w2, b2)
    assert out.shape == (batch, hidden_units[-1])
    # bf16 weights/activations (f32 accumulate) -> loosened tolerance.
    assert jnp.allclose(out, ref, atol=2e-2, rtol=2e-2), "mismatch vs reference (B=8)"

    # --- larger batch: exercises the parallel batch grid with resident weights ---
    batch_big = 256
    xb = jax.random.normal(kx, (batch_big, obs_dim), jnp.float32)
    ab = jax.random.normal(ka, (batch_big, action_size), jnp.float32)
    out_big = jax.block_until_ready(
        vector_encoder_with_action(xb, ab, w1, b1, w2, b2)
    )
    ref_big = _reference(xb, ab, w1, b1, w2, b2)
    assert out_big.shape == (batch_big, hidden_units[-1])
    assert jnp.allclose(out_big, ref_big, atol=2e-2, rtol=2e-2), "mismatch (B=256)"

    # TODO(synk): discrete_action=True one-hot path and optional batch/layer norm
    # / dropout branches are not implemented (module defaults exercised here).

    print("KERNEL_OK")
</pallas_src>

<mosaic_0001>
module attributes {stable_mosaic.version = 11 : i64} {
  func.func @_mlp2_kernel(%arg0: i32, %arg1: memref<8x32xbf16, #tpu.memory_space<vmem>>, %arg2: memref<8x8xbf16, #tpu.memory_space<vmem>>, %arg3: memref<32x256xbf16, #tpu.memory_space<vmem>>, %arg4: memref<8x256xbf16, #tpu.memory_space<vmem>>, %arg5: memref<1x256xf32, #tpu.memory_space<vmem>>, %arg6: memref<256x256xbf16, #tpu.memory_space<vmem>>, %arg7: memref<1x256xf32, #tpu.memory_space<vmem>>, %arg8: memref<8x256xf32, #tpu.memory_space<vmem>>) attributes {dimension_semantics = [#tpu.dimension_semantics<parallel>], iteration_bounds = array<i64: 1>, scalar_prefetch = 0 : i64, scratch_operands = 0 : i64, tpu.core_type = #tpu.core_type<tc>, window_params = [{transform_indices = @transform_0, window_bounds = array<i64: 8, 32>}, {transform_indices = @transform_1, window_bounds = array<i64: 8, 8>}, {pipeline_mode = #tpu.pipeline_mode<synchronous>, transform_indices = @transform_2, window_bounds = array<i64: 32, 256>}, {pipeline_mode = #tpu.pipeline_mode<synchronous>, transform_indices = @transform_3, window_bounds = array<i64: 8, 256>}, {pipeline_mode = #tpu.pipeline_mode<synchronous>, transform_indices = @transform_4, window_bounds = array<i64: 1, 256>}, {pipeline_mode = #tpu.pipeline_mode<synchronous>, transform_indices = @transform_5, window_bounds = array<i64: 256, 256>}, {pipeline_mode = #tpu.pipeline_mode<synchronous>, transform_indices = @transform_6, window_bounds = array<i64: 1, 256>}, {transform_indices = @transform_7, window_bounds = array<i64: 8, 256>}]} {
    %c0 = arith.constant 0 : index
    %c0_0 = arith.constant 0 : index
    %0 = vector.load %arg1[%c0, %c0_0] : memref<8x32xbf16, #tpu.memory_space<vmem>>, vector<8x32xbf16>
    %c0_1 = arith.constant 0 : index
    %c0_2 = arith.constant 0 : index
    %1 = vector.load %arg3[%c0_1, %c0_2] : memref<32x256xbf16, #tpu.memory_space<vmem>>, vector<32x256xbf16>
    %cst = arith.constant dense<0.000000e+00> : vector<8x256xf32>
    %2 = tpu.matmul %0, %1, %cst {dimension_numbers = #tpu.dot_dimension_numbers<[1], [0], [0], [1], [0, 0, 1, 1], [], []>} : vector<8x32xbf16>, vector<32x256xbf16>, vector<8x256xf32> -> vector<8x256xf32>
    %c0_3 = arith.constant 0 : index
    %c0_4 = arith.constant 0 : index
    %3 = vector.load %arg2[%c0_3, %c0_4] : memref<8x8xbf16, #tpu.memory_space<vmem>>, vector<8x8xbf16>
    %c0_5 = arith.constant 0 : index
    %c0_6 = arith.constant 0 : index
    %4 = vector.load %arg4[%c0_5, %c0_6] : memref<8x256xbf16, #tpu.memory_space<vmem>>, vector<8x256xbf16>
    %cst_7 = arith.constant dense<0.000000e+00> : vector<8x256xf32>
    %5 = tpu.matmul %3, %4, %cst_7 {dimension_numbers = #tpu.dot_dimension_numbers<[1], [0], [0], [1], [0, 0, 1, 1], [], []>} : vector<8x8xbf16>, vector<8x256xbf16>, vector<8x256xf32> -> vector<8x256xf32>
    %6 = arith.addf %2, %5 : vector<8x256xf32>
    %c0_8 = arith.constant 0 : index
    %c0_9 = arith.constant 0 : index
    %7 = vector.load %arg5[%c0_8, %c0_9] : memref<1x256xf32, #tpu.memory_space<vmem>>, vector<1x256xf32>
    %8 = vector.broadcast %7 : vector<1x256xf32> to vector<8x256xf32>
    %9 = arith.addf %6, %8 : vector<8x256xf32>
    %cst_10 = arith.constant 0.000000e+00 : f32
    %10 = vector.broadcast %cst_10 : f32 to vector<8x256xf32>
    %11 = arith.maximumf %9, %10 : vector<8x256xf32>
    %12 = arith.truncf %11 : vector<8x256xf32> to vector<8x256xbf16>
    %c0_11 = arith.constant 0 : index
    %c0_12 = arith.constant 0 : index
    %13 = vector.load %arg6[%c0_11, %c0_12] : memref<256x256xbf16, #tpu.memory_space<vmem>>, vector<256x256xbf16>
    %cst_13 = arith.constant dense<0.000000e+00> : vector<8x256xf32>
    %14 = tpu.matmul %12, %13, %cst_13 {dimension_numbers = #tpu.dot_dimension_numbers<[1], [0], [0], [1], [0, 0, 1, 1], [], []>} : vector<8x256xbf16>, vector<256x256xbf16>, vector<8x256xf32> -> vector<8x256xf32>
    %c0_14 = arith.constant 0 : index
    %c0_15 = arith.constant 0 : index
    %15 = vector.load %arg7[%c0_14, %c0_15] : memref<1x256xf32, #tpu.memory_space<vmem>>, vector<1x256xf32>
    %16 = vector.broadcast %15 : vector<1x256xf32> to vector<8x256xf32>
    %17 = arith.addf %14, %16 : vector<8x256xf32>
    %cst_16 = arith.constant 0.000000e+00 : f32
    %18 = vector.broadcast %cst_16 : f32 to vector<8x256xf32>
    %19 = arith.maximumf %17, %18 : vector<8x256xf32>
    %c0_17 = arith.constant 0 : index
    %c0_18 = arith.constant 0 : index
    %20 = vector.load %arg8[%c0_17, %c0_18] : memref<8x256xf32, #tpu.memory_space<vmem>>, vector<8x256xf32>
    tpu.vector_store %arg8[%c0_17, %c0_18], %19 {strides = array<i32>} : memref<8x256xf32, #tpu.memory_space<vmem>>, vector<8x256xf32>,
    return
  }
  func.func @transform_0(%arg0: i32) -> (i32, i32) {
    %c0_i32 = arith.constant 0 : i32
    %c0_i32_0 = arith.constant 0 : i32
    return %arg0, %c0_i32 : i32, i32
  }
  func.func @transform_1(%arg0: i32) -> (i32, i32) {
    %c0_i32 = arith.constant 0 : i32
    %c0_i32_0 = arith.constant 0 : i32
    return %arg0, %c0_i32 : i32, i32
  }
  func.func @transform_2(%arg0: i32) -> (i32, i32) {
    %c0_i32 = arith.constant 0 : i32
    %c0_i32_0 = arith.constant 0 : i32
    %c0_i32_1 = arith.constant 0 : i32
    return %c0_i32, %c0_i32_0 : i32, i32
  }
  func.func @transform_3(%arg0: i32) -> (i32, i32) {
    %c0_i32 = arith.constant 0 : i32
    %c0_i32_0 = arith.constant 0 : i32
    %c0_i32_1 = arith.constant 0 : i32
    return %c0_i32, %c0_i32_0 : i32, i32
  }
  func.func @transform_4(%arg0: i32) -> (i32, i32) {
    %c0_i32 = arith.constant 0 : i32
    %c0_i32_0 = arith.constant 0 : i32
    %c0_i32_1 = arith.constant 0 : i32
    return %c0_i32, %c0_i32_0 : i32, i32
  }
  func.func @transform_5(%arg0: i32) -> (i32, i32) {
    %c0_i32 = arith.constant 0 : i32
    %c0_i32_0 = arith.constant 0 : i32
    %c0_i32_1 = arith.constant 0 : i32
    return %c0_i32, %c0_i32_0 : i32, i32
  }
  func.func @transform_6(%arg0: i32) -> (i32, i32) {
    %c0_i32 = arith.constant 0 : i32
    %c0_i32_0 = arith.constant 0 : i32
    %c0_i32_1 = arith.constant 0 : i32
    return %c0_i32, %c0_i32_0 : i32, i32
  }
  func.func @transform_7(%arg0: i32) -> (i32, i32) {
    %c0_i32 = arith.constant 0 : i32
    %c0_i32_0 = arith.constant 0 : i32
    return %arg0, %c0_i32 : i32, i32
  }
}

</mosaic_0001>

<bundles_post_ra>
// kernel: tpu_custom_call.1
= control target key start
LH: loop header
LB: loop body
LE: loop exit
PB: predicated region body
PF: predicated region fallthrough
CT: control target
= control target key end

     0   :  { %12 = vsyncpa [#allocation3], 0  ;;  %s832_s0 = inlined_call_operand.hbm [shape: bf16[8,32], index: 0, kind: input, shape index: {}]   ;;  %s833_s1 = inlined_call_operand.hbm [shape: bf16[8,8], index: 1, kind: input, shape index: {}]   ;;  %s834_s2 = inlined_call_operand.hbm [shape: bf16[32,256], index: 2, kind: input, shape index: {}]   ;;  %s835_s3 = inlined_call_operand.vmem [shape: bf16[8,256], index: 3, kind: input, shape index: {}]   ;;  %s836_s4 = inlined_call_operand.vmem [shape: f32[1,256], index: 4, kind: input, shape index: {}]   ;;  %s837_s5 = inlined_call_operand.hbm [shape: bf16[256,256], index: 5, kind: input, shape index: {}]   ;;  %s838_s6 = inlined_call_operand.vmem [shape: f32[1,256], index: 6, kind: input, shape index: {}]   ;;  %s839_s7 = inlined_call_operand.hbm [shape: f32[8,256], index: 7, kind: output, shape index: {}]  }
   0x1   :  { %13 = vsyncpa [#allocation6], 0 }
   0x2   :  { %14 = vsyncpa [#allocation9], 0 }
   0x3   :  { %15 = vsyncpa [#allocation4], 0  ;;  %s715_s24 = smov [#allocation5]   ;;  %s716_s26 = smov [#allocation2]  }
   0x4   :  { %s32_s25 = sshll.u32 %s715_s24, 4  ;;  %s22_s27 = sshll.u32 %s716_s26, 4  ;;  %s33_s25 = int_to_ptr.vmem [resolvable:$true] %s32_s25  ;;  %s23_s27 = int_to_ptr.vmem [resolvable:$true] %s22_s27 }
   0x5   :  { %s597_s30 = scalar_lea.hbm %s833_s1, 64 }
   0x6   :  { %p598_p0 = scmp.ne.s32.totalorder %s833_s1, %s597_s30  ;;  %p601_p1 = scmp.lt.u32.totalorder %s597_s30, %s833_s1 }
   0x8   :  { %p603_p2 = pnand %p601_p1, %p598_p0 }
   0xa   :  { %606 = shalt.err (!%p603_p2)
}
   0xb   :  { %s607_s12 = scalar_lea.vmem %s33_s25, 64  ;;  %p612_p4 = scmp.lt.s32.totalorder %s33_s25, %s33_s25 }
   0xc   :  { %p608_p3 = scmp.ne.s32.totalorder %s33_s25, %s607_s12  ;;  %p613_p5 = scmp.lt.s32.totalorder %s607_s12, %s607_s12 }
   0xe   :  { %p614_p6 = por %p613_p5, %p612_p4 }
  0x10   :  { %p615_p7 = pnand %p614_p6, %p608_p3 }
  0x12   :  { %618 = shalt.err (!%p615_p7)
}
  0x13   :  { %35 = dma.hbm_to_vmem [thread:$0]  %s833_s1, 64, %s33_s25, [#allocation6]  }
  0x14   :  { %s619_s17 = scalar_lea.hbm %s832_s0, 64 }
  0x15   :  { %p620_p8 = scmp.ne.s32.totalorder %s832_s0, %s619_s17  ;;  %p623_p9 = scmp.lt.u32.totalorder %s619_s17, %s832_s0 }
  0x17   :  { %p625_p10 = pnand %p623_p9, %p620_p8 }
  0x19   :  { %628 = shalt.err (!%p625_p10)
}
  0x1a   :  { %s629_s22 = scalar_lea.vmem %s23_s27, 64  ;;  %p634_p12 = scmp.lt.s32.totalorder %s23_s27, %s23_s27 }
  0x1b   :  { %p630_p11 = scmp.ne.s32.totalorder %s23_s27, %s629_s22  ;;  %p635_p13 = scmp.lt.s32.totalorder %s629_s22, %s629_s22 }
  0x1d   :  { %p636_p0 = por %p635_p13, %p634_p12 }
  0x1f   :  { %p637_p1 = pnand %p636_p0, %p630_p11 }
  0x21   :  { %640 = shalt.err (!%p637_p1)
}
  0x22   :  { %25 = dma.hbm_to_vmem [thread:$0]  %s832_s0, 64, %s23_s27, [#allocation3]  }
  0x23   :  { %s717_s24 = smov [#allocation7]   ;;  %s641_s29 = scalar_lea.hbm %s834_s2, 512 }
  0x24   :  { %s41_s25 = sshll.u32 %s717_s24, 4  ;;  %p642_p2 = scmp.ne.s32.totalorder %s834_s2, %s641_s29  ;;  %s42_s25 = int_to_ptr.vmem [resolvable:$true] %s41_s25 }
  0x25   :  { %p645_p3 = scmp.lt.u32.totalorder %s641_s29, %s834_s2 }
  0x27   :  { %p647_p4 = pnand %p645_p3, %p642_p2 }
  0x29   :  { %650 = shalt.err (!%p647_p4)
}
  0x2a   :  { %s651_s11 = scalar_lea.vmem %s42_s25, 512  ;;  %p656_p6 = scmp.lt.s32.totalorder %s42_s25, %s42_s25 }
  0x2b   :  { %p652_p5 = scmp.ne.s32.totalorder %s42_s25, %s651_s11  ;;  %p657_p7 = scmp.lt.s32.totalorder %s651_s11, %s651_s11 }
  0x2d   :  { %p658_p8 = por %p657_p7, %p656_p6 }
  0x2f   :  { %p659_p9 = pnand %p658_p8, %p652_p5 }
  0x31   :  { %662 = shalt.err (!%p659_p9)
}
  0x32   :  { %s718_s0 = smov 128   ;;  %s719_s27 = smov 8  }
  0x33   :  { %47 = dma.hbm_to_vmem [thread:$0]  %s834_s2, 512, %s42_s25, [#allocation6], %s718_s0, %s718_s0, %s719_s27  }
  0x34   :  { %s720_s14 = smov [#allocation8]   ;;  %s663_s18 = scalar_lea.hbm %s837_s5, 4096 }
  0x35   :  { %s57_s15 = sshll.u32 %s720_s14, 4  ;;  %p664_p10 = scmp.ne.s32.totalorder %s837_s5, %s663_s18  ;;  %s58_s15 = int_to_ptr.vmem [resolvable:$true] %s57_s15 }
  0x36   :  { %p667_p11 = scmp.lt.u32.totalorder %s663_s18, %s837_s5 }
  0x38   :  { %p669_p12 = pnand %p667_p11, %p664_p10 }
  0x3a   :  { %672 = shalt.err (!%p669_p12)
}
  0x3b   :  { %s673_s1 = scalar_lea.vmem %s58_s15, 4096  ;;  %p678_p0 = scmp.lt.s32.totalorder %s58_s15, %s58_s15 }
  0x3c   :  { %p674_p13 = scmp.ne.s32.totalorder %s58_s15, %s673_s1  ;;  %p679_p1 = scmp.lt.s32.totalorder %s673_s1, %s673_s1 }
  0x3e   :  { %p680_p2 = por %p679_p1, %p678_p0 }
  0x40   :  { %p681_p3 = pnand %p680_p2, %p674_p13 }
  0x42   :  { %684 = shalt.err (!%p681_p3)
}
  0x43   :  { %63 = dma.hbm_to_vmem [thread:$0]  %s837_s5, 4096, %s58_s15, [#allocation9], %s718_s0, %s718_s0, %s719_s27  }
  0x44   :  { %707 = dma.done.wait [#allocation3], 64  }
  0x45   :  { %708 = vsyncadd [#allocation3], 4294967232 }
  0x46   :  { %709 = dma.done.wait [#allocation6], 576  }
  0x47   :  { %710 = vsyncadd [#allocation6], 4294966720 }
  0x48   :  { %711 = dma.done.wait [#allocation9], 4096  }
  0x49   :  { %712 = vsyncadd [#allocation9], 4294963200  ;;  %v721_v0 = vmov 0   ;;  %v85_v1 = vld [vmem:[%s835_s3] sm:$0xff]  ;;  %vm95_vm0 = vcmask 1043456   ;;  %vm91_vm1 = vcmask 64512   ;;  %v210_v43 = vlaneseq }
  0x4a   :  { %134 = vmatprep.mubr.bf16.mxu1 %v721_v0  ;;  %v493_v2 = vcombine.high %v85_v1, %v85_v1  ;;  %v492_v3 = vcombine.low %v85_v1, %v85_v1  ;;  %v545_v4 = vld [vmem:[#allocation7 + $0x4] ss:$8 sps:$4 sm:$0xff]   ;;  %v84_v5 = vld [vmem:[#allocation5] sm:$0xf]  ;;  %v543_v7 = vld [vmem:[#allocation7] ss:$8 sps:$4 sm:$0xff]  }
  0x4b   :  { %v548_v8 = vld [vmem:[#allocation7 + $0x14] ss:$8 sps:$4 sm:$0xff]   ;;  %v549_v9 = vld [vmem:[#allocation8 + $0x4] ss:$8 sps:$4 sm:$0xff]   ;;  %v551_v10 = vld [vmem:[#allocation8] ss:$8 sps:$4 sm:$0xff]  }
  0x4c   :  { %494 = vmatprep.subr.msk.bf16.mxu1 %vm95_vm0, %v493_v2  ;;  %v97_v6 = vsel %vm95_vm0, %v492_v3, 0  ;;  %v552_v11 = vld [vmem:[#allocation8 + $0x14] ss:$8 sps:$4 sm:$0xff]   ;;  %430 = vmatprep.subr.bf16.mxu0 %v549_v9  ;;  %v554_v12 = vld [vmem:[#allocation8 + $0x10] ss:$8 sps:$4 sm:$0xff]   ;;  %vm163_vm2 = vcmask 261120  }
  0x4d   :  { %103 = vmatpush1.bf16.msra.mxu1 %v97_v6  ;;  %431 = vmatpush1.bf16.msra.mxu0 %v551_v10  ;;  %v546_v13 = vld [vmem:[#allocation7 + $0x10] ss:$8 sps:$4 sm:$0xff]   ;;  %v555_v14 = vld [vmem:[#allocation8 + $0x24] ss:$8 sps:$4 sm:$0xff]   ;;  %v557_v15 = vld [vmem:[#allocation8 + $0x20] ss:$8 sps:$4 sm:$0xff]  }
  0x4e   :  { %167 = vmatprep.subr.bf16.mxu1 %v545_v4  ;;  %432 = vmatprep.subr.bf16.mxu0 %v552_v11  ;;  %v79_v16 = vld [vmem:[#allocation2] sm:$0xf]  ;;  %v558_v17 = vld [vmem:[#allocation8 + $0x34] ss:$8 sps:$4 sm:$0xff]   ;;  %v561_v19 = vld [vmem:[#allocation8 + $0x44] ss:$8 sps:$4 sm:$0xff]  }
  0x4f   :  { %v560_v18 = vld [vmem:[#allocation8 + $0x30] ss:$8 sps:$4 sm:$0xff]   ;;  %v563_v20 = vld [vmem:[#allocation8 + $0x40] ss:$8 sps:$4 sm:$0xff]   ;;  %v564_v21 = vld [vmem:[#allocation8 + $0x54] ss:$8 sps:$4 sm:$0xff]  }
  0x50   :  { %495 = vmatmul.mubr.msk.bf16.vlgmr.msra.gmra.mrb[0].mxu1 %vm91_vm1, %v84_v5  ;;  %v566_v22 = vld [vmem:[#allocation8 + $0x50] ss:$8 sps:$4 sm:$0xff]   ;;  %v567_v23 = vld [vmem:[#allocation8 + $0x64] ss:$8 sps:$4 sm:$0xff]   ;;  %v569_v24 = vld [vmem:[#allocation8 + $0x60] ss:$8 sps:$4 sm:$0xff]  }
  0x51   :  { %168 = vmatpush1.bf16.msra.mxu1 %v543_v7  ;;  %199 = vmatprep.mubr.bf16.mxu1 %v721_v0  ;;  %v570_v25 = vld [vmem:[#allocation8 + $0x74] ss:$8 sps:$4 sm:$0xff]   ;;  %v572_v26 = vld [vmem:[#allocation8 + $0x70] ss:$8 sps:$4 sm:$0xff]   ;;  %v573_v27 = vld [vmem:[#allocation8 + $0x84] ss:$8 sps:$4 sm:$0xff]  }
  0x52   :  { %169 = vmatprep.subr.bf16.mxu1 %v548_v8  ;;  %433 = vmatpush1.bf16.msra.mxu0 %v554_v12  ;;  %v575_v28 = vld [vmem:[#allocation8 + $0x80] ss:$8 sps:$4 sm:$0xff]   ;;  %v576_v29 = vld [vmem:[#allocation8 + $0x94] ss:$8 sps:$4 sm:$0xff]   ;;  %v578_v30 = vld [vmem:[#allocation8 + $0x90] ss:$8 sps:$4 sm:$0xff]  }
  0x53   :  { %434 = vmatprep.subr.bf16.mxu0 %v555_v14  ;;  %v579_v31 = vld [vmem:[#allocation8 + $0xa4] ss:$8 sps:$4 sm:$0xff]   ;;  %v581_v32 = vld [vmem:[#allocation8 + $0xa0] ss:$8 sps:$4 sm:$0xff]   ;;  %v582_v33 = vld [vmem:[#allocation8 + $0xb4] ss:$8 sps:$4 sm:$0xff]  }
  0x54   :  { %v584_v34 = vld [vmem:[#allocation8 + $0xb0] ss:$8 sps:$4 sm:$0xff]   ;;  %v585_v35 = vld [vmem:[#allocation8 + $0xc4] ss:$8 sps:$4 sm:$0xff]   ;;  %v587_v36 = vld [vmem:[#allocation8 + $0xc0] ss:$8 sps:$4 sm:$0xff]  }
  0x55   :  { %170 = vmatpush1.bf16.msra.mxu1 %v546_v13  ;;  %v588_v37 = vld [vmem:[#allocation8 + $0xd4] ss:$8 sps:$4 sm:$0xff]   ;;  %v590_v38 = vld [vmem:[#allocation8 + $0xd0] ss:$8 sps:$4 sm:$0xff]   ;;  %v591_v39 = vld [vmem:[#allocation8 + $0xe4] ss:$8 sps:$4 sm:$0xff]  }
  0x56   :  { %435 = vmatpush1.bf16.msra.mxu0 %v557_v15  ;;  %v593_v40 = vld [vmem:[#allocation8 + $0xe0] ss:$8 sps:$4 sm:$0xff]   ;;  %v594_v41 = vld [vmem:[#allocation8 + $0xf4] ss:$8 sps:$4 sm:$0xff]   ;;  %v596_v42 = vld [vmem:[#allocation8 + $0xf0] ss:$8 sps:$4 sm:$0xff]  }
  0x57   :  { %436 = vmatprep.subr.bf16.mxu0 %v558_v17  ;;  %v211_v44 = vshrl.u32 %v210_v43, 7  ;;  %v208_v50 = vld [vmem:[%s836_s4] sm:$0x3]  ;;  %s722_s4 = smov [#allocation10]  }
  0x58   :  { %500 = vmatmul.mubr.msk.bf16.vlgmr.msra.gmra.mrb[4].mxu1 %vm163_vm2, %v79_v16  ;;  %v258_v2 = vld [vmem:[%s838_s6] sm:$0x3]  ;;  %s481_s29 = sshll.u32 %s722_s4, 4  ;;  %s482_s29 = int_to_ptr.vmem [resolvable:$true] %s481_s29 }
  0x59   :  { %v212_v49 = vsub.s32 0, %v211_v44  ;;  %v216_v51 = vsub.s32 1, %v211_v44  ;;  %s685_s30 = scalar_lea.vmem %s482_s29, 256  ;;  %p690_p5 = scmp.lt.s32.totalorder %s482_s29, %s482_s29 }
  0x5a   :  { %437 = vmatpush1.bf16.msra.mxu0 %v560_v18  ;;  %p686_p4 = scmp.ne.s32.totalorder %s482_s29, %s685_s30  ;;  %p691_p6 = scmp.lt.s32.totalorder %s685_s30, %s685_s30 }
  0x5b   :  { %438 = vmatprep.subr.bf16.mxu0 %v561_v19  ;;  %v213_v52 = vrot.slane %v208_v50, %v212_v49  ;;  %v217_v54 = vrot.slane %v208_v50, %v216_v51  ;;  %v263_v3 = vrot.slane %v258_v2, %v212_v49  ;;  %v267_v4 = vrot.slane %v258_v2, %v216_v51 }
  0x5c   :  { %p692_p7 = por %p691_p6, %p690_p5 }
  0x5e   :  { %439 = vmatpush1.bf16.msra.mxu0 %v563_v20  ;;  %p693_p8 = pnand %p692_p7, %p686_p4 }
  0x5f   :  { %440 = vmatprep.subr.bf16.mxu0 %v564_v21 }
  0x62   :  { %441 = vmatpush1.bf16.msra.mxu0 %v566_v22 }
  0x63   :  { %442 = vmatprep.subr.bf16.mxu0 %v567_v23 }
  0x66   :  { %443 = vmatpush1.bf16.msra.mxu0 %v569_v24 }
  0x67   :  { %444 = vmatprep.subr.bf16.mxu0 %v570_v25 }
  0x6a   :  { %445 = vmatpush1.bf16.msra.mxu0 %v572_v26 }
  0x6b   :  { %446 = vmatprep.subr.bf16.mxu0 %v573_v27 }
  0x6e   :  { %447 = vmatpush1.bf16.msra.mxu0 %v575_v28 }
  0x6f   :  { %448 = vmatprep.subr.bf16.mxu0 %v576_v29 }
  0x72   :  { %449 = vmatpush1.bf16.msra.mxu0 %v578_v30 }
  0x73   :  { %450 = vmatprep.subr.bf16.mxu0 %v579_v31 }
  0x76   :  { %451 = vmatpush1.bf16.msra.mxu0 %v581_v32 }
  0x77   :  { %452 = vmatprep.subr.bf16.mxu0 %v582_v33 }
  0x7a   :  { %453 = vmatpush1.bf16.msra.mxu0 %v584_v34 }
  0x7b   :  { %454 = vmatprep.subr.bf16.mxu0 %v585_v35 }
  0x7e   :  { %455 = vmatpush1.bf16.msra.mxu0 %v587_v36 }
  0x7f   :  { %456 = vmatprep.subr.bf16.mxu0 %v588_v37 }
  0x82   :  { %457 = vmatpush1.bf16.msra.mxu0 %v590_v38 }
  0x83   :  { %458 = vmatprep.subr.bf16.mxu0 %v591_v39 }
  0x86   :  { %459 = vmatpush1.bf16.msra.mxu0 %v593_v40 }
  0x87   :  { %460 = vmatprep.subr.bf16.mxu0 %v594_v41 }
  0x8a   :  { %461 = vmatpush1.bf16.msra.mxu0 %v596_v42 }
 0x123   :  { %v136_v45 = vpop.f32.mrb[0].mxu1 }
 0x124   :  { %v138_v46 = vpop.f32.mrb[1].mxu1 }
 0x125   :  { %v140_v47 = vpop.f32.mrb[2].mxu1 }
 0x126   :  { %v141_v48 = vpop.f32.mrb[3].mxu1 }
 0x12b   :  { %v201_v53 = vpop.f32.mrb[4].mxu1 }
 0x12c   :  { %v202_v55 = vadd.f32 %v201_v53, %v136_v45  ;;  %v203_v56 = vpop.f32.mrb[5].mxu1 }
 0x12d   :  { %v204_v57 = vadd.f32 %v203_v56, %v138_v46  ;;  %v205_v58 = vpop.f32.mrb[6].mxu1 }
 0x12e   :  { %v220_v59 = vadd.f32 %v213_v52, %v202_v55  ;;  %v206_v60 = vpop.f32.mrb[7].mxu1 }
 0x12f   :  { %v221_v61 = vadd.f32 %v217_v54, %v204_v57 }
 0x130   :  { %v222_v62 = vmax.f32 %v220_v59, 0.0 }
 0x131   :  { %v223_v63 = vmax.f32 %v221_v61, 0.0 }
 0x132   :  { %v224_v1 = vpack.c.bf16 %v222_v62, %v222_v62 }
 0x133   :  { %v225_v0 = vpack.c.bf16 %v223_v63, %v223_v63 }
 0x135   :  { %462 = vmatprep.mubr.bf16.mxu0 %v225_v0 }
 0x136   :  { %463 = vmatmul.mubr.bf16.vlgmr.msra.gmra.mrb[0].mxu0 %v224_v1 }
 0x209   :  { %v464_v5 = vpop.f32.mrb[0].mxu0 }
 0x20a   :  { %v465_v6 = vadd.f32 %v464_v5, %v263_v3  ;;  %v466_v7 = vpop.f32.mrb[1].mxu0 }
 0x20b   :  { %v467_v8 = vadd.f32 %v466_v7, %v267_v4  ;;  %v468_v9 = vpop.f32.mrb[2].mxu0 }
 0x20c   :  { %v471_v10 = vmax.f32 %v465_v6, 0.0  ;;  %v469_v11 = vpop.f32.mrb[3].mxu0 }
 0x20d   :  { %v472_v12 = vmax.f32 %v467_v8, 0.0 }
 0x20e   :  { %473 = vst [vmem:[#allocation10] sm:$0xff] %v471_v10 }
 0x20f   :  { %474 = vst [vmem:[#allocation10 + $0x8] sm:$0xff] %v472_v12 }
 0x210   :  { %696 = shalt.err (!%p693_p8)
}
 0x211   :  { %s697_s9 = scalar_lea.hbm %s839_s7, 256 }
 0x212   :  { %p698_p9 = scmp.ne.s32.totalorder %s839_s7, %s697_s9  ;;  %p701_p10 = scmp.lt.u32.totalorder %s697_s9, %s839_s7 }
 0x214   :  { %p703_p11 = pnand %p701_p10, %p698_p9 }
 0x216   :  { %706 = shalt.err (!%p703_p11)
}
 0x217   :  { %484 = dma.vmem_to_hbm [thread:$0]  %s482_s29, 256, %s839_s7, [#allocation4]  }
 0x218   :  { %713 = dma.done.wait [#allocation4], 256  }
 0x219   :  { %714 = vsyncadd [#allocation4], 4294967040 }
 0x21a   :  { %488 = vsyncpa [#allocation3], 1 }
 0x21b   :  { %489 = vsyncpa [#allocation6], 1 }
 0x21c   :  { %490 = vsyncpa [#allocation9], 1 }
 0x21d   :  { %491 = vsyncpa [#allocation4], 1 }

</bundles_post_ra>
